<compile_context>
chip_gen: v6e
topology: v6e:2x2x1
jax: 0.10.0
libtpu: 0.0.40
codegen_flags: <defaults>
</compile_context>

<pallas_src>
import functools

import jax
import jax.numpy as jnp
from jax.experimental import pallas as pl
from jax.experimental.pallas import tpu as pltpu


_MIB = 1024 * 1024


def _round_up(x, m):
    return ((x + m - 1) // m) * m


def _vmem_capacity_bytes():
    try:
        return int(pltpu.get_tpu_info().vmem_capacity_bytes)
    except Exception:
        return 64 * _MIB  # conservative fallback (v7x per-TensorCore VMEM)


def _pick_tile(n, t_max, *, t_min=256, min_tiles=1, max_pad=0.10):
    """Largest 256-aligned tile <= t_max such that padding n up to the tile wastes
    <= max_pad of n and yields >= min_tiles tiles (halve until satisfied)."""
    t = t_max
    while t > t_min:
        n_pad = _round_up(n, t)
        if n_pad // t >= min_tiles and (n_pad - n) <= max_pad * max(n, 1):
            return t
        t //= 2
    return t_min


# ---------------------------------------------------------------------------
# Projection kernel: h1 = h @ W  (f32 refs, in-kernel bf16 cast, f32 MXU acc).
# ---------------------------------------------------------------------------
def _project_kernel(h_ref, w_ref, o_ref):
    h = h_ref[...].astype(jnp.bfloat16)
    w = w_ref[...].astype(jnp.bfloat16)
    o_ref[...] = jnp.dot(h, w, preferred_element_type=jnp.float32).astype(o_ref.dtype)


def _project_features(h, w, *, tile):
    n, f_in = h.shape
    f_out = w.shape[1]
    return pl.pallas_call(
        _project_kernel,
        out_shape=jax.ShapeDtypeStruct((n, f_out), jnp.bfloat16),
        grid_spec=pltpu.PrefetchScalarGridSpec(
            num_scalar_prefetch=0,
            grid=(n // tile,),
            in_specs=[
                pl.BlockSpec((tile, f_in), lambda i: (i, 0)),    # h tile (f32, cast in-kernel)
                pl.BlockSpec((f_in, f_out), lambda i: (0, 0)),   # full W, resident
            ],
            out_specs=pl.BlockSpec((tile, f_out), lambda i: (i, 0)),
        ),
        compiler_params=pltpu.CompilerParams(
            dimension_semantics=("parallel",),
        ),
        cost_estimate=pl.CostEstimate(
            flops=2 * n * f_in * f_out,
            transcendentals=0,
            bytes_accessed=n * f_in * h.dtype.itemsize
            + f_in * f_out * w.dtype.itemsize
            + n * f_out * 2,
        ),
    )(h, w)


# ---------------------------------------------------------------------------
# Aggregation kernels: out = relu(A @ h1), reduction over source-node tiles.
# The f32 output block is VMEM-resident across the reduction axis, so we
# accumulate directly into it (no scratch accumulator).  A is cast to bf16
# in-kernel (no extra HBM pass for the dominant traffic).
# ---------------------------------------------------------------------------
def _agg_kernel_resident(a_ref, h1_ref, o_ref, *, tk):
    k = pl.program_id(1)

    @pl.when(k == 0)
    def _():
        o_ref[...] = jnp.zeros_like(o_ref)

    a = a_ref[...].astype(jnp.bfloat16)            # no-op if A already bf16
    src0 = pl.multiple_of(k * tk, tk)
    o_ref[...] += jnp.dot(a, h1_ref[pl.ds(src0, tk), :],
                          preferred_element_type=jnp.float32)

    @pl.when(k == pl.num_programs(1) - 1)
    def _():
        o_ref[...] = jnp.maximum(o_ref[...], 0.0)  # activation = ReLU


def _agg_kernel_streamed(a_ref, h1_ref, o_ref):
    k = pl.program_id(1)

    @pl.when(k == 0)
    def _():
        o_ref[...] = jnp.zeros_like(o_ref)

    a = a_ref[...].astype(jnp.bfloat16)
    o_ref[...] += jnp.dot(a, h1_ref[...], preferred_element_type=jnp.float32)

    @pl.when(k == pl.num_programs(1) - 1)
    def _():
        o_ref[...] = jnp.maximum(o_ref[...], 0.0)  # activation = ReLU


def evolve_gcn_layer(adj, h, weight, *, tm_max=1024, tk_max=2048):
    """relu(adj @ (h @ weight)) — EvolveGCNLayer.forward with a dense weighted
    adjacency A[dst, src] (activation=ReLU, dropout p=0.0 -> identity).

    adj:    [N, N]        f32 (pass a pre-cast bf16 copy only if the same adjacency
                           is reused across many time steps)
    h:      [N, F_in]     f32 node features
    weight: [F_in, F_out] f32
    returns [N, F_out]    f32
    """
    N, F_in = h.shape
    F_out = weight.shape[1]
    assert adj.shape == (N, N)
    # bf16 packed tile is (16,128); 256-aligned tiles also keep the 256-wide MXU fed.
    assert tm_max % 256 == 0 and tk_max % 256 == 0

    # --- Tile selection ------------------------------------------------------
    # dst axis: >=2 tiles so both v7x TensorCores get work; src (reduction) axis: big
    # tiles to amortize per-grid-step overhead.  Both shrink if padding would waste
    # more than ~10% of the (bandwidth-dominant) adjacency traffic.
    tm = _pick_tile(N, tm_max, min_tiles=2)
    tk = _pick_tile(N, tk_max, min_tiles=1)

    N_pad_dst = _round_up(N, tm)
    N_pad_src = _round_up(N, tk)
    pad_d = N_pad_dst - N
    pad_s = N_pad_src - N

    # --- Adjacency feed (the dominant HBM traffic) ---------------------------
    if pad_d or pad_s:
        # Pad + convert emitted together so XLA fuses them into a single pass;
        # the kernel then streams bf16 tiles (2 B/elem).
        adj_in = jnp.pad(adj, ((0, pad_d), (0, pad_s)))
        if adj_in.dtype != jnp.bfloat16:
            adj_in = adj_in.astype(jnp.bfloat16)
    else:
        # No out-of-kernel pass at all: stream A as-is, cast to bf16 inside the kernel.
        adj_in = adj

    # --- Projection: h1 = h @ W (computed exactly once) ----------------------
    h_p = h if pad_s == 0 else jnp.pad(h, ((0, pad_s), (0, 0)))
    t_proj = min(tk, 1024)                         # divides N_pad_src
    h1 = _project_features(h_p, weight, tile=t_proj)   # [N_pad_src, F_out] bf16

    # --- VMEM budgeting -------------------------------------------------------
    cap = _vmem_capacity_bytes()
    a_item = adj_in.dtype.itemsize
    a_bufs = 2 * tm * tk * a_item                  # double-buffered A tile
    out_bufs = 2 * tm * F_out * 4                  # double-buffered f32 output block
    h1_bytes = N_pad_src * F_out * 2
    # Resident h1 is double-buffered by the pipeline (constant index_map -> DMA'd
    # once per core, but two buffers are allocated); budget keeps >=12 MiB margin
    # under the vmem_limit cap below on every generation (64..128 MiB VMEM).
    resident_budget = max(0, min(cap // 4, (cap - a_bufs - out_bufs - 28 * _MIB) // 2))
    resident = h1_bytes <= resident_budget

    if resident:
        kernel = functools.partial(_agg_kernel_resident, tk=tk)
        h1_spec = pl.BlockSpec((N_pad_src, F_out), lambda i, k: (0, 0))   # fully VMEM-resident
        h1_bufs = 2 * h1_bytes
        h1_hbm_reads = 1
    else:
        kernel = _agg_kernel_streamed
        h1_spec = pl.BlockSpec((tk, F_out), lambda i, k: (k, 0))          # streamed per src tile
        h1_bufs = 2 * tk * F_out * 2
        h1_hbm_reads = N_pad_dst // tm             # h1 re-read once per dst tile

    vmem_need = a_bufs + h1_bufs + out_bufs
    vmem_limit = int(min(cap - 16 * _MIB, max(vmem_need + 12 * _MIB, 24 * _MIB)))

    out = pl.pallas_call(
        kernel,
        out_shape=jax.ShapeDtypeStruct((N_pad_dst, F_out), jnp.float32),
        grid_spec=pltpu.PrefetchScalarGridSpec(
            num_scalar_prefetch=0,
            grid=(N_pad_dst // tm, N_pad_src // tk),   # (dst tiles, src tiles); reduction last
            in_specs=[
                pl.BlockSpec((tm, tk), lambda i, k: (i, k)),   # A tile (cast to bf16 in-kernel)
                h1_spec,                                       # h1 (bf16)
            ],
            out_specs=pl.BlockSpec((tm, F_out), lambda i, k: (i, 0)),
        ),
        compiler_params=pltpu.CompilerParams(
            dimension_semantics=("parallel", "arbitrary"),
            vmem_limit_bytes=vmem_limit,
        ),
        cost_estimate=pl.CostEstimate(
            flops=2 * N_pad_dst * N_pad_src * F_out,
            transcendentals=0,
            bytes_accessed=(N_pad_dst * N_pad_src * a_item
                            + h1_hbm_reads * h1_bytes
                            + N_pad_dst * F_out * 4),
        ),
    )(adj_in, h1)

    return out[:N]


if __name__ == "__main__":
    # Small deterministic example: N=1000 nodes (exercises independent dst/src padding),
    # in_feats=64, out_feats=128; ~10% dense weighted adjacency.
    key = jax.random.PRNGKey(0)
    k_h, k_w, k_a, k_m = jax.random.split(key, 4)

    N, F_in, F_out = 1000, 64, 128
    h = jax.random.normal(k_h, (N, F_in), dtype=jnp.float32)
    weight = jax.random.normal(k_w, (F_in, F_out), dtype=jnp.float32) * (1.0 / jnp.sqrt(F_in))

    edge_w = jax.random.uniform(k_a, (N, N), dtype=jnp.float32)
    mask = (jax.random.uniform(k_m, (N, N)) < 0.1).astype(jnp.float32)
    adj = edge_w * mask  # A[dst, src]

    out = evolve_gcn_layer(adj, h, weight)
    out = jax.block_until_ready(out)

    # Reference matching the kernel's bf16 input quantization (f32 MXU accumulation).
    h1_ref = jnp.dot(h.astype(jnp.bfloat16), weight.astype(jnp.bfloat16),
                     preferred_element_type=jnp.float32).astype(jnp.bfloat16)
    ref = jnp.maximum(
        jnp.dot(adj.astype(jnp.bfloat16), h1_ref, preferred_element_type=jnp.float32),
        0.0,
    )

    assert out.shape == (N, F_out)
    assert jnp.allclose(out, ref, atol=2e-2, rtol=2e-2)

    print("KERNEL_OK")
</pallas_src>

<mosaic_0001>
module attributes {stable_mosaic.version = 11 : i64} {
  func.func @_project_kernel(%arg0: i32, %arg1: memref<1024x64xf32, #tpu.memory_space<vmem>>, %arg2: memref<64x128xf32, #tpu.memory_space<vmem>>, %arg3: memref<1024x128xbf16, #tpu.memory_space<vmem>>) attributes {dimension_semantics = [#tpu.dimension_semantics<parallel>], iteration_bounds = array<i64: 1>, scalar_prefetch = 0 : i64, scratch_operands = 0 : i64, tpu.core_type = #tpu.core_type<tc>, window_params = [{transform_indices = @transform_0, window_bounds = array<i64: 1024, 64>}, {pipeline_mode = #tpu.pipeline_mode<synchronous>, transform_indices = @transform_1, window_bounds = array<i64: 64, 128>}, {transform_indices = @transform_2, window_bounds = array<i64: 1024, 128>}]} {
    %c0 = arith.constant 0 : index
    %c0_0 = arith.constant 0 : index
    %0 = vector.load %arg1[%c0, %c0_0] : memref<1024x64xf32, #tpu.memory_space<vmem>>, vector<1024x64xf32>
    %1 = arith.truncf %0 : vector<1024x64xf32> to vector<1024x64xbf16>
    %c0_1 = arith.constant 0 : index
    %c0_2 = arith.constant 0 : index
    %2 = vector.load %arg2[%c0_1, %c0_2] : memref<64x128xf32, #tpu.memory_space<vmem>>, vector<64x128xf32>
    %3 = arith.truncf %2 : vector<64x128xf32> to vector<64x128xbf16>
    %cst = arith.constant dense<0.000000e+00> : vector<1024x128xf32>
    %4 = tpu.matmul %1, %3, %cst {dimension_numbers = #tpu.dot_dimension_numbers<[1], [0], [0], [1], [0, 0, 1, 1], [], []>} : vector<1024x64xbf16>, vector<64x128xbf16>, vector<1024x128xf32> -> vector<1024x128xf32>
    %5 = arith.truncf %4 : vector<1024x128xf32> to vector<1024x128xbf16>
    %c0_3 = arith.constant 0 : index
    %c0_4 = arith.constant 0 : index
    %6 = vector.load %arg3[%c0_3, %c0_4] : memref<1024x128xbf16, #tpu.memory_space<vmem>>, vector<1024x128xbf16>
    tpu.vector_store %arg3[%c0_3, %c0_4], %5 {strides = array<i32>} : memref<1024x128xbf16, #tpu.memory_space<vmem>>, vector<1024x128xbf16>,
    return
  }
  func.func @transform_0(%arg0: i32) -> (i32, i32) {
    %c0_i32 = arith.constant 0 : i32
    %c0_i32_0 = arith.constant 0 : i32
    return %arg0, %c0_i32 : i32, i32
  }
  func.func @transform_1(%arg0: i32) -> (i32, i32) {
    %c0_i32 = arith.constant 0 : i32
    %c0_i32_0 = arith.constant 0 : i32
    %c0_i32_1 = arith.constant 0 : i32
    return %c0_i32, %c0_i32_0 : i32, i32
  }
  func.func @transform_2(%arg0: i32) -> (i32, i32) {
    %c0_i32 = arith.constant 0 : i32
    %c0_i32_0 = arith.constant 0 : i32
    return %arg0, %c0_i32 : i32, i32
  }
}

</mosaic_0001>

<bundles_post_ra>
// kernel: tpu_custom_call.1
= control target key start
LH: loop header
LB: loop body
LE: loop exit
PB: predicated region body
PF: predicated region fallthrough
CT: control target
= control target key end

     0   :  { %vm217_vm0 = vcmask 523264   ;;  %s3044_s0 = inlined_call_operand.vmem [shape: f32[1024,64], index: 0, kind: input, shape index: {}]   ;;  %s3045_s1 = inlined_call_operand.vmem [shape: f32[64,128], index: 1, kind: input, shape index: {}]   ;;  %s3046_s2 = inlined_call_operand.hbm [shape: bf16[1024,128], index: 2, kind: output, shape index: {}]  }
   0x1   :  { %v211_v0 = vld [vmem:[%s3045_s1 + $0x30] sm:$0xff]  ;;  %v212_v1 = vld [vmem:[%s3045_s1 + $0x38] sm:$0xff]  ;;  %v209_v2 = vld [vmem:[%s3045_s1 + $0x20] sm:$0xff] }
   0x2   :  { %v216_v3 = vpack.c.bf16 %v212_v1, %v211_v0  ;;  %v210_v4 = vld [vmem:[%s3045_s1 + $0x28] sm:$0xff]  ;;  %v207_v6 = vld [vmem:[%s3045_s1 + $0x10] sm:$0xff]  ;;  %v208_v7 = vld [vmem:[%s3045_s1 + $0x18] sm:$0xff] }
   0x3   :  { %v215_v5 = vpack.c.bf16 %v210_v4, %v209_v2  ;;  %v13_v8 = vld [vmem:[%s3044_s0] sm:$0xff]  ;;  %v14_v9 = vld [vmem:[%s3044_s0 + $0x8] sm:$0xff]  ;;  %v214_v14 = vpack.c.bf16 %v208_v7, %v207_v6  ;;  %v15_v18 = vld [vmem:[%s3044_s0 + $0x10] sm:$0xff] }
   0x4   :  { %2382 = vmatprep.subr.bf16.mxu0 %v216_v3  ;;  %2518 = vmatprep.subr.bf16.mxu1 %v216_v3  ;;  %v77_v10 = vld [vmem:[%s3044_s0 + $0x200] sm:$0xff]  ;;  %v78_v11 = vld [vmem:[%s3044_s0 + $0x208] sm:$0xff]  ;;  %v141_v12 = vpack.c.bf16 %v14_v9, %v13_v8  ;;  %v16_v19 = vld [vmem:[%s3044_s0 + $0x18] sm:$0xff] }
   0x5   :  { %2383 = vmatpush3.bf16.msra.mxu0 %v216_v3  ;;  %2522 = vmatpush3.bf16.msra.mxu1 %v216_v3  ;;  %v173_v13 = vpack.c.bf16 %v78_v11, %v77_v10  ;;  %v205_v15 = vld [vmem:[%s3045_s1] sm:$0xff]  ;;  %v206_v16 = vld [vmem:[%s3045_s1 + $0x8] sm:$0xff]  ;;  %v79_v20 = vld [vmem:[%s3044_s0 + $0x210] sm:$0xff]  ;;  %v142_v26 = vpack.c.bf16 %v16_v19, %v15_v18 }
   0x6   :  { %2384 = vmatprep.subr.bf16.mxu0 %v215_v5  ;;  %2519 = vmatprep.subr.bf16.mxu1 %v215_v5  ;;  %v213_v17 = vpack.c.bf16 %v206_v16, %v205_v15  ;;  %v80_v21 = vld [vmem:[%s3044_s0 + $0x218] sm:$0xff]  ;;  %v17_v22 = vld [vmem:[%s3044_s0 + $0x20] sm:$0xff]  ;;  %v18_v23 = vld [vmem:[%s3044_s0 + $0x28] sm:$0xff] }
   0x7   :  { %2390 = vmatprep.mubr.msk.bf16.mxu0 %vm217_vm0, %v141_v12  ;;  %2454 = vmatprep.mubr.msk.bf16.mxu1 %vm217_vm0, %v173_v13  ;;  %v81_v24 = vld [vmem:[%s3044_s0 + $0x220] sm:$0xff]  ;;  %v82_v25 = vld [vmem:[%s3044_s0 + $0x228] sm:$0xff]  ;;  %v174_v27 = vpack.c.bf16 %v80_v21, %v79_v20  ;;  %v143_v28 = vpack.c.bf16 %v18_v23, %v17_v22  ;;  %v19_v30 = vld [vmem:[%s3044_s0 + $0x30] sm:$0xff] }
   0x8   :  { %v175_v29 = vpack.c.bf16 %v82_v25, %v81_v24  ;;  %v20_v31 = vld [vmem:[%s3044_s0 + $0x38] sm:$0xff]  ;;  %v83_v32 = vld [vmem:[%s3044_s0 + $0x230] sm:$0xff]  ;;  %v21_v34 = vld [vmem:[%s3044_s0 + $0x40] sm:$0xff] }
   0x9   :  { %2385 = vmatpush3.bf16.msra.mxu0 %v215_v5  ;;  %2523 = vmatpush3.bf16.msra.mxu1 %v215_v5  ;;  %v84_v33 = vld [vmem:[%s3044_s0 + $0x238] sm:$0xff]  ;;  %v22_v35 = vld [vmem:[%s3044_s0 + $0x48] sm:$0xff]  ;;  %v85_v36 = vld [vmem:[%s3044_s0 + $0x240] sm:$0xff]  ;;  %v144_v38 = vpack.c.bf16 %v20_v31, %v19_v30 }
   0xa   :  { %2386 = vmatprep.subr.bf16.mxu0 %v214_v14  ;;  %2520 = vmatprep.subr.bf16.mxu1 %v214_v14  ;;  %v86_v37 = vld [vmem:[%s3044_s0 + $0x248] sm:$0xff]  ;;  %v176_v39 = vpack.c.bf16 %v84_v33, %v83_v32  ;;  %v145_v40 = vpack.c.bf16 %v22_v35, %v21_v34  ;;  %v23_v42 = vld [vmem:[%s3044_s0 + $0x50] sm:$0xff]  ;;  %v24_v43 = vld [vmem:[%s3044_s0 + $0x58] sm:$0xff] }
   0xb   :  { %v177_v41 = vpack.c.bf16 %v86_v37, %v85_v36  ;;  %v87_v44 = vld [vmem:[%s3044_s0 + $0x250] sm:$0xff]  ;;  %v88_v45 = vld [vmem:[%s3044_s0 + $0x258] sm:$0xff]  ;;  %v25_v46 = vld [vmem:[%s3044_s0 + $0x60] sm:$0xff]  ;;  %v146_v50 = vpack.c.bf16 %v24_v43, %v23_v42 }
   0xc   :  { %v26_v47 = vld [vmem:[%s3044_s0 + $0x68] sm:$0xff]  ;;  %v89_v48 = vld [vmem:[%s3044_s0 + $0x260] sm:$0xff]  ;;  %v178_v51 = vpack.c.bf16 %v88_v45, %v87_v44  ;;  %v27_v54 = vld [vmem:[%s3044_s0 + $0x70] sm:$0xff] }
   0xd   :  { %2387 = vmatpush3.bf16.msra.mxu0 %v214_v14  ;;  %2524 = vmatpush3.bf16.msra.mxu1 %v214_v14  ;;  %v90_v49 = vld [vmem:[%s3044_s0 + $0x268] sm:$0xff]  ;;  %v147_v52 = vpack.c.bf16 %v26_v47, %v25_v46  ;;  %v28_v55 = vld [vmem:[%s3044_s0 + $0x78] sm:$0xff]  ;;  %v91_v56 = vld [vmem:[%s3044_s0 + $0x270] sm:$0xff] }
   0xe   :  { %2388 = vmatprep.subr.bf16.mxu0 %v213_v17  ;;  %2521 = vmatprep.subr.bf16.mxu1 %v213_v17  ;;  %v179_v53 = vpack.c.bf16 %v90_v49, %v89_v48  ;;  %v92_v57 = vld [vmem:[%s3044_s0 + $0x278] sm:$0xff]  ;;  %v29_v58 = vld [vmem:[%s3044_s0 + $0x80] sm:$0xff]  ;;  %v30_v59 = vld [vmem:[%s3044_s0 + $0x88] sm:$0xff]  ;;  %v148_v62 = vpack.c.bf16 %v28_v55, %v27_v54 }
   0xf   :  { %v93_v60 = vld [vmem:[%s3044_s0 + $0x280] sm:$0xff]  ;;  %v94_v61 = vld [vmem:[%s3044_s0 + $0x288] sm:$0xff]  ;;  %v180_v63 = vpack.c.bf16 %v92_v57, %v91_v56  ;;  %v149_v0 = vpack.c.bf16 %v30_v59, %v29_v58  ;;  %v31_v2 = vld [vmem:[%s3044_s0 + $0x90] sm:$0xff] }
  0x10   :  { %v181_v1 = vpack.c.bf16 %v94_v61, %v93_v60  ;;  %v32_v3 = vld [vmem:[%s3044_s0 + $0x98] sm:$0xff]  ;;  %v95_v4 = vld [vmem:[%s3044_s0 + $0x290] sm:$0xff]  ;;  %v33_v6 = vld [vmem:[%s3044_s0 + $0xa0] sm:$0xff] }
  0x11   :  { %2389 = vmatpush3.bf16.msra.mxu0 %v213_v17  ;;  %2525 = vmatpush3.bf16.msra.mxu1 %v213_v17  ;;  %v96_v5 = vld [vmem:[%s3044_s0 + $0x298] sm:$0xff]  ;;  %v34_v7 = vld [vmem:[%s3044_s0 + $0xa8] sm:$0xff]  ;;  %v97_v8 = vld [vmem:[%s3044_s0 + $0x2a0] sm:$0xff] }
  0x12   :  { %v98_v9 = vld [vmem:[%s3044_s0 + $0x2a8] sm:$0xff] }
  0x14   :  { %2391 = vmatmul.mubr.msk.bf16.vlgmr.msra.gmra.mxu0 %vm217_vm0, %v142_v26  ;;  %2455 = vmatmul.mubr.msk.bf16.vlgmr.msra.gmra.mxu1 %vm217_vm0, %v174_v27 }
  0x15   :  { %2394 = vmatprep.mubr.msk.bf16.mxu0 %vm217_vm0, %v143_v28  ;;  %2458 = vmatprep.mubr.msk.bf16.mxu1 %vm217_vm0, %v175_v29 }
  0x1c   :  { %2395 = vmatmul.mubr.msk.bf16.gmra.mxu0 %vm217_vm0, %v144_v38  ;;  %2459 = vmatmul.mubr.msk.bf16.gmra.mxu1 %vm217_vm0, %v176_v39 }
  0x1d   :  { %2398 = vmatprep.mubr.msk.bf16.mxu0 %vm217_vm0, %v145_v40  ;;  %2462 = vmatprep.mubr.msk.bf16.mxu1 %vm217_vm0, %v177_v41 }
  0x24   :  { %2399 = vmatmul.mubr.msk.bf16.gmra.mxu0 %vm217_vm0, %v146_v50  ;;  %2463 = vmatmul.mubr.msk.bf16.gmra.mxu1 %vm217_vm0, %v178_v51 }
  0x25   :  { %2402 = vmatprep.mubr.msk.bf16.mxu0 %vm217_vm0, %v147_v52  ;;  %2466 = vmatprep.mubr.msk.bf16.mxu1 %vm217_vm0, %v179_v53 }
  0x2c   :  { %2403 = vmatmul.mubr.msk.bf16.gmra.mxu0 %vm217_vm0, %v148_v62  ;;  %2467 = vmatmul.mubr.msk.bf16.gmra.mxu1 %vm217_vm0, %v180_v63 }
  0x2d   :  { %2406 = vmatprep.mubr.msk.bf16.mxu0 %vm217_vm0, %v149_v0  ;;  %2470 = vmatprep.mubr.msk.bf16.mxu1 %vm217_vm0, %v181_v1 }
  0x2e   :  { %7 = vsyncpa [#allocation3], 0  ;;  %v150_v10 = vpack.c.bf16 %v32_v3, %v31_v2  ;;  %v182_v11 = vpack.c.bf16 %v96_v5, %v95_v4  ;;  %v151_v12 = vpack.c.bf16 %v34_v7, %v33_v6  ;;  %v183_v13 = vpack.c.bf16 %v98_v9, %v97_v8  ;;  %v35_v14 = vld [vmem:[%s3044_s0 + $0xb0] sm:$0xff]  ;;  %v36_v15 = vld [vmem:[%s3044_s0 + $0xb8] sm:$0xff] }
  0x2f   :  { %v99_v16 = vld [vmem:[%s3044_s0 + $0x2b0] sm:$0xff]  ;;  %v100_v17 = vld [vmem:[%s3044_s0 + $0x2b8] sm:$0xff]  ;;  %v37_v18 = vld [vmem:[%s3044_s0 + $0xc0] sm:$0xff]  ;;  %v152_v22 = vpack.c.bf16 %v36_v15, %v35_v14 }
  0x30   :  { %v38_v19 = vld [vmem:[%s3044_s0 + $0xc8] sm:$0xff]  ;;  %v101_v20 = vld [vmem:[%s3044_s0 + $0x2c0] sm:$0xff]  ;;  %v184_v23 = vpack.c.bf16 %v100_v17, %v99_v16  ;;  %v39_v26 = vld [vmem:[%s3044_s0 + $0xd0] sm:$0xff] }
  0x31   :  { %v102_v21 = vld [vmem:[%s3044_s0 + $0x2c8] sm:$0xff]  ;;  %v153_v24 = vpack.c.bf16 %v38_v19, %v37_v18  ;;  %v40_v27 = vld [vmem:[%s3044_s0 + $0xd8] sm:$0xff]  ;;  %v103_v28 = vld [vmem:[%s3044_s0 + $0x2d0] sm:$0xff] }
  0x32   :  { %v185_v25 = vpack.c.bf16 %v102_v21, %v101_v20  ;;  %v104_v29 = vld [vmem:[%s3044_s0 + $0x2d8] sm:$0xff]  ;;  %v41_v30 = vld [vmem:[%s3044_s0 + $0xe0] sm:$0xff]  ;;  %v42_v31 = vld [vmem:[%s3044_s0 + $0xe8] sm:$0xff]  ;;  %v154_v34 = vpack.c.bf16 %v40_v27, %v39_v26 }
  0x33   :  { %v105_v32 = vld [vmem:[%s3044_s0 + $0x2e0] sm:$0xff]  ;;  %v106_v33 = vld [vmem:[%s3044_s0 + $0x2e8] sm:$0xff]  ;;  %v186_v35 = vpack.c.bf16 %v104_v29, %v103_v28  ;;  %v155_v36 = vpack.c.bf16 %v42_v31, %v41_v30  ;;  %v43_v38 = vld [vmem:[%s3044_s0 + $0xf0] sm:$0xff] }
  0x34   :  { %2407 = vmatmul.mubr.msk.bf16.gmra.mxu0 %vm217_vm0, %v150_v10  ;;  %2471 = vmatmul.mubr.msk.bf16.gmra.mxu1 %vm217_vm0, %v182_v11  ;;  %v187_v37 = vpack.c.bf16 %v106_v33, %v105_v32  ;;  %v44_v39 = vld [vmem:[%s3044_s0 + $0xf8] sm:$0xff]  ;;  %v107_v40 = vld [vmem:[%s3044_s0 + $0x2f0] sm:$0xff]  ;;  %v45_v42 = vld [vmem:[%s3044_s0 + $0x100] sm:$0xff] }
  0x35   :  { %2410 = vmatprep.mubr.msk.bf16.mxu0 %vm217_vm0, %v151_v12  ;;  %2474 = vmatprep.mubr.msk.bf16.mxu1 %vm217_vm0, %v183_v13  ;;  %v108_v41 = vld [vmem:[%s3044_s0 + $0x2f8] sm:$0xff]  ;;  %v46_v43 = vld [vmem:[%s3044_s0 + $0x108] sm:$0xff]  ;;  %v109_v44 = vld [vmem:[%s3044_s0 + $0x300] sm:$0xff]  ;;  %v156_v46 = vpack.c.bf16 %v44_v39, %v43_v38 }
  0x36   :  { %v110_v45 = vld [vmem:[%s3044_s0 + $0x308] sm:$0xff]  ;;  %v188_v47 = vpack.c.bf16 %v108_v41, %v107_v40  ;;  %v157_v48 = vpack.c.bf16 %v46_v43, %v45_v42  ;;  %v47_v50 = vld [vmem:[%s3044_s0 + $0x110] sm:$0xff]  ;;  %v48_v51 = vld [vmem:[%s3044_s0 + $0x118] sm:$0xff] }
  0x37   :  { %v189_v49 = vpack.c.bf16 %v110_v45, %v109_v44  ;;  %v111_v52 = vld [vmem:[%s3044_s0 + $0x310] sm:$0xff]  ;;  %v112_v53 = vld [vmem:[%s3044_s0 + $0x318] sm:$0xff]  ;;  %v49_v54 = vld [vmem:[%s3044_s0 + $0x120] sm:$0xff]  ;;  %v158_v58 = vpack.c.bf16 %v48_v51, %v47_v50 }
  0x38   :  { %v50_v55 = vld [vmem:[%s3044_s0 + $0x128] sm:$0xff]  ;;  %v113_v56 = vld [vmem:[%s3044_s0 + $0x320] sm:$0xff]  ;;  %v190_v59 = vpack.c.bf16 %v112_v53, %v111_v52  ;;  %v51_v62 = vld [vmem:[%s3044_s0 + $0x130] sm:$0xff] }
  0x39   :  { %v114_v57 = vld [vmem:[%s3044_s0 + $0x328] sm:$0xff]  ;;  %v159_v60 = vpack.c.bf16 %v50_v55, %v49_v54  ;;  %v52_v63 = vld [vmem:[%s3044_s0 + $0x138] sm:$0xff]  ;;  %v115_v0 = vld [vmem:[%s3044_s0 + $0x330] sm:$0xff] }
  0x3a   :  { %v191_v61 = vpack.c.bf16 %v114_v57, %v113_v56  ;;  %v116_v1 = vld [vmem:[%s3044_s0 + $0x338] sm:$0xff]  ;;  %v53_v2 = vld [vmem:[%s3044_s0 + $0x140] sm:$0xff]  ;;  %v54_v3 = vld [vmem:[%s3044_s0 + $0x148] sm:$0xff]  ;;  %v160_v6 = vpack.c.bf16 %v52_v63, %v51_v62 }
  0x3b   :  { %v117_v4 = vld [vmem:[%s3044_s0 + $0x340] sm:$0xff]  ;;  %v118_v5 = vld [vmem:[%s3044_s0 + $0x348] sm:$0xff]  ;;  %v192_v7 = vpack.c.bf16 %v116_v1, %v115_v0  ;;  %v161_v8 = vpack.c.bf16 %v54_v3, %v53_v2  ;;  %v55_v10 = vld [vmem:[%s3044_s0 + $0x150] sm:$0xff] }
  0x3c   :  { %2411 = vmatmul.mubr.msk.bf16.gmra.mxu0 %vm217_vm0, %v152_v22  ;;  %2475 = vmatmul.mubr.msk.bf16.gmra.mxu1 %vm217_vm0, %v184_v23  ;;  %v193_v9 = vpack.c.bf16 %v118_v5, %v117_v4  ;;  %v56_v11 = vld [vmem:[%s3044_s0 + $0x158] sm:$0xff]  ;;  %v119_v12 = vld [vmem:[%s3044_s0 + $0x350] sm:$0xff]  ;;  %v57_v14 = vld [vmem:[%s3044_s0 + $0x160] sm:$0xff] }
  0x3d   :  { %2414 = vmatprep.mubr.msk.bf16.mxu0 %vm217_vm0, %v153_v24  ;;  %2478 = vmatprep.mubr.msk.bf16.mxu1 %vm217_vm0, %v185_v25  ;;  %v120_v13 = vld [vmem:[%s3044_s0 + $0x358] sm:$0xff]  ;;  %v58_v15 = vld [vmem:[%s3044_s0 + $0x168] sm:$0xff]  ;;  %v121_v16 = vld [vmem:[%s3044_s0 + $0x360] sm:$0xff]  ;;  %v162_v18 = vpack.c.bf16 %v56_v11, %v55_v10 }
  0x3e   :  { %v122_v17 = vld [vmem:[%s3044_s0 + $0x368] sm:$0xff]  ;;  %v194_v19 = vpack.c.bf16 %v120_v13, %v119_v12  ;;  %v163_v20 = vpack.c.bf16 %v58_v15, %v57_v14  ;;  %v59_v22 = vld [vmem:[%s3044_s0 + $0x170] sm:$0xff]  ;;  %v60_v23 = vld [vmem:[%s3044_s0 + $0x178] sm:$0xff] }
  0x3f   :  { %v195_v21 = vpack.c.bf16 %v122_v17, %v121_v16  ;;  %v123_v24 = vld [vmem:[%s3044_s0 + $0x370] sm:$0xff]  ;;  %v124_v25 = vld [vmem:[%s3044_s0 + $0x378] sm:$0xff]  ;;  %v61_v26 = vld [vmem:[%s3044_s0 + $0x180] sm:$0xff]  ;;  %v164_v30 = vpack.c.bf16 %v60_v23, %v59_v22 }
  0x40   :  { %v62_v27 = vld [vmem:[%s3044_s0 + $0x188] sm:$0xff]  ;;  %v125_v28 = vld [vmem:[%s3044_s0 + $0x380] sm:$0xff]  ;;  %v196_v31 = vpack.c.bf16 %v124_v25, %v123_v24 }
  0x41   :  { %v126_v29 = vld [vmem:[%s3044_s0 + $0x388] sm:$0xff]  ;;  %v165_v32 = vpack.c.bf16 %v62_v27, %v61_v26  ;;  %v65_v38 = vld [vmem:[%s3044_s0 + $0x1a0] sm:$0xff] }
  0x42   :  { %v197_v33 = vpack.c.bf16 %v126_v29, %v125_v28  ;;  %v66_v39 = vld [vmem:[%s3044_s0 + $0x1a8] sm:$0xff]  ;;  %v129_v40 = vld [vmem:[%s3044_s0 + $0x3a0] sm:$0xff] }
  0x43   :  { %v130_v41 = vld [vmem:[%s3044_s0 + $0x3a8] sm:$0xff]  ;;  %v167_v44 = vpack.c.bf16 %v66_v39, %v65_v38  ;;  %v69_v50 = vld [vmem:[%s3044_s0 + $0x1c0] sm:$0xff] }
  0x44   :  { %2415 = vmatmul.mubr.msk.bf16.gmra.mxu0 %vm217_vm0, %v154_v34  ;;  %2479 = vmatmul.mubr.msk.bf16.gmra.mxu1 %vm217_vm0, %v186_v35  ;;  %v63_v34 = vld [vmem:[%s3044_s0 + $0x190] sm:$0xff]  ;;  %v64_v35 = vld [vmem:[%s3044_s0 + $0x198] sm:$0xff]  ;;  %v199_v45 = vpack.c.bf16 %v130_v41, %v129_v40  ;;  %v70_v51 = vld [vmem:[%s3044_s0 + $0x1c8] sm:$0xff] }
  0x45   :  { %2418 = vmatprep.mubr.msk.bf16.mxu0 %vm217_vm0, %v155_v36  ;;  %2482 = vmatprep.mubr.msk.bf16.mxu1 %vm217_vm0, %v187_v37  ;;  %v127_v36 = vld [vmem:[%s3044_s0 + $0x390] sm:$0xff]  ;;  %v128_v37 = vld [vmem:[%s3044_s0 + $0x398] sm:$0xff]  ;;  %v166_v42 = vpack.c.bf16 %v64_v35, %v63_v34  ;;  %v133_v52 = vld [vmem:[%s3044_s0 + $0x3c0] sm:$0xff]  ;;  %v169_v56 = vpack.c.bf16 %v70_v51, %v69_v50 }
  0x46   :  { %v198_v43 = vpack.c.bf16 %v128_v37, %v127_v36  ;;  %v134_v53 = vld [vmem:[%s3044_s0 + $0x3c8] sm:$0xff]  ;;  %v73_v62 = vld [vmem:[%s3044_s0 + $0x1e0] sm:$0xff] }
  0x47   :  { %v201_v57 = vpack.c.bf16 %v134_v53, %v133_v52  ;;  %v74_v63 = vld [vmem:[%s3044_s0 + $0x1e8] sm:$0xff]  ;;  %v137_v0 = vld [vmem:[%s3044_s0 + $0x3e0] sm:$0xff] }
  0x48   :  { %v138_v1 = vld [vmem:[%s3044_s0 + $0x3e8] sm:$0xff]  ;;  %v171_v4 = vpack.c.bf16 %v74_v63, %v73_v62 }
  0x49   :  { %v203_v5 = vpack.c.bf16 %v138_v1, %v137_v0 }
  0x4c   :  { %2419 = vmatmul.mubr.msk.bf16.gmra.mxu0 %vm217_vm0, %v156_v46  ;;  %2483 = vmatmul.mubr.msk.bf16.gmra.mxu1 %vm217_vm0, %v188_v47  ;;  %v67_v46 = vld [vmem:[%s3044_s0 + $0x1b0] sm:$0xff]  ;;  %v68_v47 = vld [vmem:[%s3044_s0 + $0x1b8] sm:$0xff] }
  0x4d   :  { %2422 = vmatprep.mubr.msk.bf16.mxu0 %vm217_vm0, %v157_v48  ;;  %2486 = vmatprep.mubr.msk.bf16.mxu1 %vm217_vm0, %v189_v49  ;;  %v131_v48 = vld [vmem:[%s3044_s0 + $0x3b0] sm:$0xff]  ;;  %v132_v49 = vld [vmem:[%s3044_s0 + $0x3b8] sm:$0xff]  ;;  %v168_v54 = vpack.c.bf16 %v68_v47, %v67_v46 }
  0x4e   :  { %v200_v55 = vpack.c.bf16 %v132_v49, %v131_v48 }
  0x54   :  { %2423 = vmatmul.mubr.msk.bf16.gmra.mxu0 %vm217_vm0, %v158_v58  ;;  %2487 = vmatmul.mubr.msk.bf16.gmra.mxu1 %vm217_vm0, %v190_v59  ;;  %v71_v58 = vld [vmem:[%s3044_s0 + $0x1d0] sm:$0xff]  ;;  %v72_v59 = vld [vmem:[%s3044_s0 + $0x1d8] sm:$0xff] }
  0x55   :  { %2426 = vmatprep.mubr.msk.bf16.mxu0 %vm217_vm0, %v159_v60  ;;  %2490 = vmatprep.mubr.msk.bf16.mxu1 %vm217_vm0, %v191_v61  ;;  %v135_v60 = vld [vmem:[%s3044_s0 + $0x3d0] sm:$0xff]  ;;  %v136_v61 = vld [vmem:[%s3044_s0 + $0x3d8] sm:$0xff]  ;;  %v170_v2 = vpack.c.bf16 %v72_v59, %v71_v58 }
  0x56   :  { %v202_v3 = vpack.c.bf16 %v136_v61, %v135_v60 }
  0x5c   :  { %2427 = vmatmul.mubr.msk.bf16.gmra.mxu0 %vm217_vm0, %v160_v6  ;;  %2491 = vmatmul.mubr.msk.bf16.gmra.mxu1 %vm217_vm0, %v192_v7  ;;  %v75_v6 = vld [vmem:[%s3044_s0 + $0x1f0] sm:$0xff]  ;;  %v76_v7 = vld [vmem:[%s3044_s0 + $0x1f8] sm:$0xff] }
  0x5d   :  { %2430 = vmatprep.mubr.msk.bf16.mxu0 %vm217_vm0, %v161_v8  ;;  %2494 = vmatprep.mubr.msk.bf16.mxu1 %vm217_vm0, %v193_v9  ;;  %v139_v8 = vld [vmem:[%s3044_s0 + $0x3f0] sm:$0xff]  ;;  %v140_v9 = vld [vmem:[%s3044_s0 + $0x3f8] sm:$0xff]  ;;  %v172_v10 = vpack.c.bf16 %v76_v7, %v75_v6  ;;  %s2551_s0 = smov [#allocation2]  }
  0x5e   :  { %v204_v11 = vpack.c.bf16 %v140_v9, %v139_v8  ;;  %s1600_s20 = sshll.u32 %s2551_s0, 4  ;;  %s1601_s20 = int_to_ptr.vmem [resolvable:$true] %s1600_s20 }
  0x5f   :  { %s2529_s21 = scalar_lea.vmem %s1601_s20, 8192  ;;  %p2534_p1 = scmp.lt.s32.totalorder %s1601_s20, %s1601_s20 }
  0x60   :  { %p2530_p0 = scmp.ne.s32.totalorder %s1601_s20, %s2529_s21  ;;  %p2535_p2 = scmp.lt.s32.totalorder %s2529_s21, %s2529_s21 }
  0x62   :  { %p2536_p3 = por %p2535_p2, %p2534_p1 }
  0x64   :  { %2431 = vmatmul.mubr.msk.bf16.gmra.mxu0 %vm217_vm0, %v162_v18  ;;  %2495 = vmatmul.mubr.msk.bf16.gmra.mxu1 %vm217_vm0, %v194_v19  ;;  %p2537_p4 = pnand %p2536_p3, %p2530_p0 }
  0x65   :  { %2434 = vmatprep.mubr.msk.bf16.mxu0 %vm217_vm0, %v163_v20  ;;  %2498 = vmatprep.mubr.msk.bf16.mxu1 %vm217_vm0, %v195_v21 }
  0x6c   :  { %2435 = vmatmul.mubr.msk.bf16.gmra.mxu0 %vm217_vm0, %v164_v30  ;;  %2499 = vmatmul.mubr.msk.bf16.gmra.mxu1 %vm217_vm0, %v196_v31 }
  0x6d   :  { %2438 = vmatprep.mubr.msk.bf16.mxu0 %vm217_vm0, %v165_v32  ;;  %2502 = vmatprep.mubr.msk.bf16.mxu1 %vm217_vm0, %v197_v33 }
  0x74   :  { %2439 = vmatmul.mubr.msk.bf16.gmra.mxu0 %vm217_vm0, %v166_v42  ;;  %2503 = vmatmul.mubr.msk.bf16.gmra.mxu1 %vm217_vm0, %v198_v43 }
  0x75   :  { %2442 = vmatprep.mubr.msk.bf16.mxu0 %vm217_vm0, %v167_v44  ;;  %2506 = vmatprep.mubr.msk.bf16.mxu1 %vm217_vm0, %v199_v45 }
  0x7c   :  { %2443 = vmatmul.mubr.msk.bf16.gmra.mxu0 %vm217_vm0, %v168_v54  ;;  %2507 = vmatmul.mubr.msk.bf16.gmra.mxu1 %vm217_vm0, %v200_v55 }
  0x7d   :  { %2446 = vmatprep.mubr.msk.bf16.mxu0 %vm217_vm0, %v169_v56  ;;  %2510 = vmatprep.mubr.msk.bf16.mxu1 %vm217_vm0, %v201_v57 }
  0x84   :  { %2447 = vmatmul.mubr.msk.bf16.gmra.mxu0 %vm217_vm0, %v170_v2  ;;  %2511 = vmatmul.mubr.msk.bf16.gmra.mxu1 %vm217_vm0, %v202_v3 }
  0x85   :  { %2450 = vmatprep.mubr.msk.bf16.mxu0 %vm217_vm0, %v171_v4  ;;  %2514 = vmatprep.mubr.msk.bf16.mxu1 %vm217_vm0, %v203_v5 }
  0x8c   :  { %2451 = vmatmul.mubr.msk.bf16.gmra.mxu0 %vm217_vm0, %v172_v10  ;;  %2515 = vmatmul.mubr.msk.bf16.gmra.mxu1 %vm217_vm0, %v204_v11 }
  0xd4   :  { %v2392_v12 = vpop.f32.mrf.mxu0  ;;  %v2456_v13 = vpop.f32.mrf.mxu1 }
  0xd6   :  { %v444_v14 = vpop.f32.mrf.mxu0  ;;  %v700_v15 = vpop.f32.mrf.mxu1 }
  0xd8   :  { %v2393_v16 = vpop.f32.mrf.mxu0  ;;  %v2457_v17 = vpop.f32.mrf.mxu1 }
  0xd9   :  { %v1939_v18 = vpack.c.bf16 %v2393_v16, %v2392_v12  ;;  %v2099_v19 = vpack.c.bf16 %v2457_v17, %v2456_v13 }
  0xda   :  { %v447_v20 = vpop.f32.mrf.mxu0  ;;  %v703_v21 = vpop.f32.mrf.mxu1 }
  0xdb   :  { %2251 = vst [vmem:[#allocation2 + $0x8] sm:$0xff] %v1939_v18   ;;  %2283 = vst [vmem:[#allocation2 + $0x108] sm:$0xff] %v2099_v19   ;;  %v1934_v22 = vpack.c.bf16 %v447_v20, %v444_v14  ;;  %v2094_v23 = vpack.c.bf16 %v703_v21, %v700_v15 }
  0xdc   :  { %v2396_v24 = vpop.f32.mrf.mxu0  ;;  %v2460_v25 = vpop.f32.mrf.mxu1 }
  0xdd   :  { %1935 = vst [vmem:[#allocation2] sm:$0xff] %v1934_v22   ;;  %2282 = vst [vmem:[#allocation2 + $0x100] sm:$0xff] %v2094_v23  }
  0xde   :  { %v460_v26 = vpop.f32.mrf.mxu0  ;;  %v716_v27 = vpop.f32.mrf.mxu1 }
  0xe0   :  { %v2397_v28 = vpop.f32.mrf.mxu0  ;;  %v2461_v29 = vpop.f32.mrf.mxu1 }
  0xe1   :  { %v1949_v30 = vpack.c.bf16 %v2397_v28, %v2396_v24  ;;  %v2109_v31 = vpack.c.bf16 %v2461_v29, %v2460_v25 }
  0xe2   :  { %v463_v32 = vpop.f32.mrf.mxu0  ;;  %v719_v33 = vpop.f32.mrf.mxu1 }
  0xe3   :  { %2253 = vst [vmem:[#allocation2 + $0x18] sm:$0xff] %v1949_v30   ;;  %2285 = vst [vmem:[#allocation2 + $0x118] sm:$0xff] %v2109_v31   ;;  %v1944_v34 = vpack.c.bf16 %v463_v32, %v460_v26  ;;  %v2104_v35 = vpack.c.bf16 %v719_v33, %v716_v27 }
  0xe4   :  { %v2400_v36 = vpop.f32.mrf.mxu0  ;;  %v2464_v37 = vpop.f32.mrf.mxu1 }
  0xe5   :  { %2252 = vst [vmem:[#allocation2 + $0x10] sm:$0xff] %v1944_v34   ;;  %2284 = vst [vmem:[#allocation2 + $0x110] sm:$0xff] %v2104_v35  }
  0xe6   :  { %v476_v38 = vpop.f32.mrf.mxu0  ;;  %v732_v39 = vpop.f32.mrf.mxu1 }
  0xe8   :  { %v2401_v40 = vpop.f32.mrf.mxu0  ;;  %v2465_v41 = vpop.f32.mrf.mxu1 }
  0xe9   :  { %v1959_v42 = vpack.c.bf16 %v2401_v40, %v2400_v36  ;;  %v2119_v43 = vpack.c.bf16 %v2465_v41, %v2464_v37 }
  0xea   :  { %v479_v44 = vpop.f32.mrf.mxu0  ;;  %v735_v45 = vpop.f32.mrf.mxu1 }
  0xeb   :  { %2255 = vst [vmem:[#allocation2 + $0x28] sm:$0xff] %v1959_v42   ;;  %2287 = vst [vmem:[#allocation2 + $0x128] sm:$0xff] %v2119_v43   ;;  %v1954_v46 = vpack.c.bf16 %v479_v44, %v476_v38  ;;  %v2114_v47 = vpack.c.bf16 %v735_v45, %v732_v39 }
  0xec   :  { %v2404_v48 = vpop.f32.mrf.mxu0  ;;  %v2468_v49 = vpop.f32.mrf.mxu1 }
  0xed   :  { %2254 = vst [vmem:[#allocation2 + $0x20] sm:$0xff] %v1954_v46   ;;  %2286 = vst [vmem:[#allocation2 + $0x120] sm:$0xff] %v2114_v47  }
  0xee   :  { %v492_v50 = vpop.f32.mrf.mxu0  ;;  %v748_v51 = vpop.f32.mrf.mxu1 }
  0xf0   :  { %v2405_v52 = vpop.f32.mrf.mxu0  ;;  %v2469_v53 = vpop.f32.mrf.mxu1 }
  0xf1   :  { %v1969_v54 = vpack.c.bf16 %v2405_v52, %v2404_v48  ;;  %v2129_v55 = vpack.c.bf16 %v2469_v53, %v2468_v49 }
  0xf2   :  { %v495_v56 = vpop.f32.mrf.mxu0  ;;  %v751_v57 = vpop.f32.mrf.mxu1 }
  0xf3   :  { %2257 = vst [vmem:[#allocation2 + $0x38] sm:$0xff] %v1969_v54   ;;  %2289 = vst [vmem:[#allocation2 + $0x138] sm:$0xff] %v2129_v55   ;;  %v1964_v58 = vpack.c.bf16 %v495_v56, %v492_v50  ;;  %v2124_v59 = vpack.c.bf16 %v751_v57, %v748_v51 }
  0xf4   :  { %v2408_v60 = vpop.f32.mrf.mxu0  ;;  %v2472_v61 = vpop.f32.mrf.mxu1 }
  0xf5   :  { %2256 = vst [vmem:[#allocation2 + $0x30] sm:$0xff] %v1964_v58   ;;  %2288 = vst [vmem:[#allocation2 + $0x130] sm:$0xff] %v2124_v59  }
  0xf6   :  { %v508_v62 = vpop.f32.mrf.mxu0  ;;  %v764_v63 = vpop.f32.mrf.mxu1 }
  0xf8   :  { %v2409_v0 = vpop.f32.mrf.mxu0  ;;  %v2473_v1 = vpop.f32.mrf.mxu1 }
  0xf9   :  { %v1979_v2 = vpack.c.bf16 %v2409_v0, %v2408_v60  ;;  %v2139_v3 = vpack.c.bf16 %v2473_v1, %v2472_v61 }
  0xfa   :  { %v511_v4 = vpop.f32.mrf.mxu0  ;;  %v767_v5 = vpop.f32.mrf.mxu1 }
  0xfb   :  { %2259 = vst [vmem:[#allocation2 + $0x48] sm:$0xff] %v1979_v2   ;;  %2291 = vst [vmem:[#allocation2 + $0x148] sm:$0xff] %v2139_v3   ;;  %v1974_v6 = vpack.c.bf16 %v511_v4, %v508_v62  ;;  %v2134_v7 = vpack.c.bf16 %v767_v5, %v764_v63 }
  0xfc   :  { %v2412_v8 = vpop.f32.mrf.mxu0  ;;  %v2476_v9 = vpop.f32.mrf.mxu1 }
  0xfd   :  { %2258 = vst [vmem:[#allocation2 + $0x40] sm:$0xff] %v1974_v6   ;;  %2290 = vst [vmem:[#allocation2 + $0x140] sm:$0xff] %v2134_v7  }
  0xfe   :  { %v524_v10 = vpop.f32.mrf.mxu0  ;;  %v780_v11 = vpop.f32.mrf.mxu1 }
 0x100   :  { %v2413_v12 = vpop.f32.mrf.mxu0  ;;  %v2477_v13 = vpop.f32.mrf.mxu1 }
 0x101   :  { %v1989_v14 = vpack.c.bf16 %v2413_v12, %v2412_v8  ;;  %v2149_v15 = vpack.c.bf16 %v2477_v13, %v2476_v9 }
 0x102   :  { %v527_v16 = vpop.f32.mrf.mxu0  ;;  %v783_v17 = vpop.f32.mrf.mxu1 }
 0x103   :  { %2261 = vst [vmem:[#allocation2 + $0x58] sm:$0xff] %v1989_v14   ;;  %2293 = vst [vmem:[#allocation2 + $0x158] sm:$0xff] %v2149_v15   ;;  %v1984_v18 = vpack.c.bf16 %v527_v16, %v524_v10  ;;  %v2144_v19 = vpack.c.bf16 %v783_v17, %v780_v11 }
 0x104   :  { %v2416_v20 = vpop.f32.mrf.mxu0  ;;  %v2480_v21 = vpop.f32.mrf.mxu1 }
 0x105   :  { %2260 = vst [vmem:[#allocation2 + $0x50] sm:$0xff] %v1984_v18   ;;  %2292 = vst [vmem:[#allocation2 + $0x150] sm:$0xff] %v2144_v19  }
 0x106   :  { %v540_v22 = vpop.f32.mrf.mxu0  ;;  %v796_v23 = vpop.f32.mrf.mxu1 }
 0x108   :  { %v2417_v24 = vpop.f32.mrf.mxu0  ;;  %v2481_v25 = vpop.f32.mrf.mxu1 }
 0x109   :  { %v1999_v26 = vpack.c.bf16 %v2417_v24, %v2416_v20  ;;  %v2159_v27 = vpack.c.bf16 %v2481_v25, %v2480_v21 }
 0x10a   :  { %v543_v28 = vpop.f32.mrf.mxu0  ;;  %v799_v29 = vpop.f32.mrf.mxu1 }
 0x10b   :  { %2263 = vst [vmem:[#allocation2 + $0x68] sm:$0xff] %v1999_v26   ;;  %2295 = vst [vmem:[#allocation2 + $0x168] sm:$0xff] %v2159_v27   ;;  %v1994_v30 = vpack.c.bf16 %v543_v28, %v540_v22  ;;  %v2154_v31 = vpack.c.bf16 %v799_v29, %v796_v23 }
 0x10c   :  { %v2420_v32 = vpop.f32.mrf.mxu0  ;;  %v2484_v33 = vpop.f32.mrf.mxu1 }
 0x10d   :  { %2262 = vst [vmem:[#allocation2 + $0x60] sm:$0xff] %v1994_v30   ;;  %2294 = vst [vmem:[#allocation2 + $0x160] sm:$0xff] %v2154_v31  }
 0x10e   :  { %v556_v34 = vpop.f32.mrf.mxu0  ;;  %v812_v35 = vpop.f32.mrf.mxu1 }
 0x110   :  { %v2421_v36 = vpop.f32.mrf.mxu0  ;;  %v2485_v37 = vpop.f32.mrf.mxu1 }
 0x111   :  { %v2009_v38 = vpack.c.bf16 %v2421_v36, %v2420_v32  ;;  %v2169_v39 = vpack.c.bf16 %v2485_v37, %v2484_v33 }
 0x112   :  { %v559_v40 = vpop.f32.mrf.mxu0  ;;  %v815_v41 = vpop.f32.mrf.mxu1 }
 0x113   :  { %2265 = vst [vmem:[#allocation2 + $0x78] sm:$0xff] %v2009_v38   ;;  %2297 = vst [vmem:[#allocation2 + $0x178] sm:$0xff] %v2169_v39   ;;  %v2004_v42 = vpack.c.bf16 %v559_v40, %v556_v34  ;;  %v2164_v43 = vpack.c.bf16 %v815_v41, %v812_v35 }
 0x114   :  { %v2424_v44 = vpop.f32.mrf.mxu0  ;;  %v2488_v45 = vpop.f32.mrf.mxu1 }
 0x115   :  { %2264 = vst [vmem:[#allocation2 + $0x70] sm:$0xff] %v2004_v42   ;;  %2296 = vst [vmem:[#allocation2 + $0x170] sm:$0xff] %v2164_v43  }
 0x116   :  { %v572_v46 = vpop.f32.mrf.mxu0  ;;  %v828_v47 = vpop.f32.mrf.mxu1 }
 0x118   :  { %v2425_v48 = vpop.f32.mrf.mxu0  ;;  %v2489_v49 = vpop.f32.mrf.mxu1 }
 0x119   :  { %v2019_v50 = vpack.c.bf16 %v2425_v48, %v2424_v44  ;;  %v2179_v51 = vpack.c.bf16 %v2489_v49, %v2488_v45 }
 0x11a   :  { %v575_v52 = vpop.f32.mrf.mxu0  ;;  %v831_v53 = vpop.f32.mrf.mxu1 }
 0x11b   :  { %2267 = vst [vmem:[#allocation2 + $0x88] sm:$0xff] %v2019_v50   ;;  %2299 = vst [vmem:[#allocation2 + $0x188] sm:$0xff] %v2179_v51   ;;  %v2014_v54 = vpack.c.bf16 %v575_v52, %v572_v46  ;;  %v2174_v55 = vpack.c.bf16 %v831_v53, %v828_v47 }
 0x11c   :  { %v2428_v56 = vpop.f32.mrf.mxu0  ;;  %v2492_v57 = vpop.f32.mrf.mxu1 }
 0x11d   :  { %2266 = vst [vmem:[#allocation2 + $0x80] sm:$0xff] %v2014_v54   ;;  %2298 = vst [vmem:[#allocation2 + $0x180] sm:$0xff] %v2174_v55  }
 0x11e   :  { %v588_v58 = vpop.f32.mrf.mxu0  ;;  %v844_v59 = vpop.f32.mrf.mxu1 }
 0x120   :  { %v2429_v60 = vpop.f32.mrf.mxu0  ;;  %v2493_v61 = vpop.f32.mrf.mxu1 }
 0x121   :  { %v2029_v62 = vpack.c.bf16 %v2429_v60, %v2428_v56  ;;  %v2189_v63 = vpack.c.bf16 %v2493_v61, %v2492_v57 }
 0x122   :  { %v591_v0 = vpop.f32.mrf.mxu0  ;;  %v847_v1 = vpop.f32.mrf.mxu1 }
 0x123   :  { %2269 = vst [vmem:[#allocation2 + $0x98] sm:$0xff] %v2029_v62   ;;  %2301 = vst [vmem:[#allocation2 + $0x198] sm:$0xff] %v2189_v63   ;;  %v2024_v2 = vpack.c.bf16 %v591_v0, %v588_v58  ;;  %v2184_v3 = vpack.c.bf16 %v847_v1, %v844_v59 }
 0x124   :  { %v2432_v4 = vpop.f32.mrf.mxu0  ;;  %v2496_v5 = vpop.f32.mrf.mxu1 }
 0x125   :  { %2268 = vst [vmem:[#allocation2 + $0x90] sm:$0xff] %v2024_v2   ;;  %2300 = vst [vmem:[#allocation2 + $0x190] sm:$0xff] %v2184_v3  }
 0x126   :  { %v604_v6 = vpop.f32.mrf.mxu0  ;;  %v860_v7 = vpop.f32.mrf.mxu1 }
 0x128   :  { %v2433_v8 = vpop.f32.mrf.mxu0  ;;  %v2497_v9 = vpop.f32.mrf.mxu1 }
 0x129   :  { %v2039_v10 = vpack.c.bf16 %v2433_v8, %v2432_v4  ;;  %v2199_v11 = vpack.c.bf16 %v2497_v9, %v2496_v5 }
 0x12a   :  { %v607_v12 = vpop.f32.mrf.mxu0  ;;  %v863_v13 = vpop.f32.mrf.mxu1 }
 0x12b   :  { %2271 = vst [vmem:[#allocation2 + $0xa8] sm:$0xff] %v2039_v10   ;;  %2303 = vst [vmem:[#allocation2 + $0x1a8] sm:$0xff] %v2199_v11   ;;  %v2034_v14 = vpack.c.bf16 %v607_v12, %v604_v6  ;;  %v2194_v15 = vpack.c.bf16 %v863_v13, %v860_v7 }
 0x12c   :  { %v2436_v16 = vpop.f32.mrf.mxu0  ;;  %v2500_v17 = vpop.f32.mrf.mxu1 }
 0x12d   :  { %2270 = vst [vmem:[#allocation2 + $0xa0] sm:$0xff] %v2034_v14   ;;  %2302 = vst [vmem:[#allocation2 + $0x1a0] sm:$0xff] %v2194_v15  }
 0x12e   :  { %v620_v18 = vpop.f32.mrf.mxu0  ;;  %v876_v19 = vpop.f32.mrf.mxu1 }
 0x130   :  { %v2437_v20 = vpop.f32.mrf.mxu0  ;;  %v2501_v21 = vpop.f32.mrf.mxu1 }
 0x131   :  { %v2049_v22 = vpack.c.bf16 %v2437_v20, %v2436_v16  ;;  %v2209_v23 = vpack.c.bf16 %v2501_v21, %v2500_v17 }
 0x132   :  { %v623_v24 = vpop.f32.mrf.mxu0  ;;  %v879_v25 = vpop.f32.mrf.mxu1 }
 0x133   :  { %2273 = vst [vmem:[#allocation2 + $0xb8] sm:$0xff] %v2049_v22   ;;  %2305 = vst [vmem:[#allocation2 + $0x1b8] sm:$0xff] %v2209_v23   ;;  %v2044_v26 = vpack.c.bf16 %v623_v24, %v620_v18  ;;  %v2204_v27 = vpack.c.bf16 %v879_v25, %v876_v19 }
 0x134   :  { %v2440_v28 = vpop.f32.mrf.mxu0  ;;  %v2504_v29 = vpop.f32.mrf.mxu1 }
 0x135   :  { %2272 = vst [vmem:[#allocation2 + $0xb0] sm:$0xff] %v2044_v26   ;;  %2304 = vst [vmem:[#allocation2 + $0x1b0] sm:$0xff] %v2204_v27  }
 0x136   :  { %v636_v30 = vpop.f32.mrf.mxu0  ;;  %v892_v31 = vpop.f32.mrf.mxu1 }
 0x138   :  { %v2441_v32 = vpop.f32.mrf.mxu0  ;;  %v2505_v33 = vpop.f32.mrf.mxu1 }
 0x139   :  { %v2059_v34 = vpack.c.bf16 %v2441_v32, %v2440_v28  ;;  %v2219_v35 = vpack.c.bf16 %v2505_v33, %v2504_v29 }
 0x13a   :  { %v639_v36 = vpop.f32.mrf.mxu0  ;;  %v895_v37 = vpop.f32.mrf.mxu1 }
 0x13b   :  { %2275 = vst [vmem:[#allocation2 + $0xc8] sm:$0xff] %v2059_v34   ;;  %2307 = vst [vmem:[#allocation2 + $0x1c8] sm:$0xff] %v2219_v35   ;;  %v2054_v38 = vpack.c.bf16 %v639_v36, %v636_v30  ;;  %v2214_v39 = vpack.c.bf16 %v895_v37, %v892_v31 }
 0x13c   :  { %v2444_v40 = vpop.f32.mrf.mxu0  ;;  %v2508_v41 = vpop.f32.mrf.mxu1 }
 0x13d   :  { %2274 = vst [vmem:[#allocation2 + $0xc0] sm:$0xff] %v2054_v38   ;;  %2306 = vst [vmem:[#allocation2 + $0x1c0] sm:$0xff] %v2214_v39  }
 0x13e   :  { %v652_v42 = vpop.f32.mrf.mxu0  ;;  %v908_v43 = vpop.f32.mrf.mxu1 }
 0x140   :  { %v2445_v44 = vpop.f32.mrf.mxu0  ;;  %v2509_v45 = vpop.f32.mrf.mxu1 }
 0x141   :  { %v2069_v46 = vpack.c.bf16 %v2445_v44, %v2444_v40  ;;  %v2229_v47 = vpack.c.bf16 %v2509_v45, %v2508_v41 }
 0x142   :  { %v655_v48 = vpop.f32.mrf.mxu0  ;;  %v911_v49 = vpop.f32.mrf.mxu1 }
 0x143   :  { %2277 = vst [vmem:[#allocation2 + $0xd8] sm:$0xff] %v2069_v46   ;;  %2309 = vst [vmem:[#allocation2 + $0x1d8] sm:$0xff] %v2229_v47   ;;  %v2064_v50 = vpack.c.bf16 %v655_v48, %v652_v42  ;;  %v2224_v51 = vpack.c.bf16 %v911_v49, %v908_v43 }
 0x144   :  { %v2448_v52 = vpop.f32.mrf.mxu0  ;;  %v2512_v53 = vpop.f32.mrf.mxu1 }
 0x145   :  { %2276 = vst [vmem:[#allocation2 + $0xd0] sm:$0xff] %v2064_v50   ;;  %2308 = vst [vmem:[#allocation2 + $0x1d0] sm:$0xff] %v2224_v51  }
 0x146   :  { %v668_v54 = vpop.f32.mrf.mxu0  ;;  %v924_v55 = vpop.f32.mrf.mxu1 }
 0x148   :  { %v2449_v56 = vpop.f32.mrf.mxu0  ;;  %v2513_v57 = vpop.f32.mrf.mxu1 }
 0x149   :  { %v2079_v58 = vpack.c.bf16 %v2449_v56, %v2448_v52  ;;  %v2239_v59 = vpack.c.bf16 %v2513_v57, %v2512_v53 }
 0x14a   :  { %v671_v60 = vpop.f32.mrf.mxu0  ;;  %v927_v61 = vpop.f32.mrf.mxu1 }
 0x14b   :  { %2279 = vst [vmem:[#allocation2 + $0xe8] sm:$0xff] %v2079_v58   ;;  %2311 = vst [vmem:[#allocation2 + $0x1e8] sm:$0xff] %v2239_v59   ;;  %v2074_v62 = vpack.c.bf16 %v671_v60, %v668_v54  ;;  %v2234_v63 = vpack.c.bf16 %v927_v61, %v924_v55 }
 0x14c   :  { %v2452_v0 = vpop.f32.mrf.mxu0  ;;  %v2516_v1 = vpop.f32.mrf.mxu1 }
 0x14d   :  { %2278 = vst [vmem:[#allocation2 + $0xe0] sm:$0xff] %v2074_v62   ;;  %2310 = vst [vmem:[#allocation2 + $0x1e0] sm:$0xff] %v2234_v63  }
 0x14e   :  { %v684_v2 = vpop.f32.mrf.mxu0  ;;  %v940_v3 = vpop.f32.mrf.mxu1 }
 0x150   :  { %v2453_v4 = vpop.f32.mrf.mxu0  ;;  %v2517_v5 = vpop.f32.mrf.mxu1 }
 0x151   :  { %v2089_v6 = vpack.c.bf16 %v2453_v4, %v2452_v0  ;;  %v2249_v7 = vpack.c.bf16 %v2517_v5, %v2516_v1 }
 0x152   :  { %v687_v8 = vpop.f32.mrf.mxu0  ;;  %v943_v9 = vpop.f32.mrf.mxu1 }
 0x153   :  { %2281 = vst [vmem:[#allocation2 + $0xf8] sm:$0xff] %v2089_v6   ;;  %2313 = vst [vmem:[#allocation2 + $0x1f8] sm:$0xff] %v2249_v7   ;;  %v2084_v10 = vpack.c.bf16 %v687_v8, %v684_v2  ;;  %v2244_v11 = vpack.c.bf16 %v943_v9, %v940_v3 }
 0x155   :  { %2280 = vst [vmem:[#allocation2 + $0xf0] sm:$0xff] %v2084_v10   ;;  %2312 = vst [vmem:[#allocation2 + $0x1f0] sm:$0xff] %v2244_v11  }
 0x156   :  { %2540 = shalt.err (!%p2537_p4)
}
 0x157   :  { %s2552_s22 = smov 64   ;;  %s2553_s23 = smov 4  }
 0x158   :  { %1606 = dma.vmem_to_hbm [thread:$0]  %s1601_s20, 8192, %s3046_s2, [#allocation3], %s2552_s22, %s2552_s22, %s2553_s23  }
 0x159   :  { %2549 = dma.done.wait [#allocation3], 8192  }
 0x15a   :  { %2550 = vsyncadd [#allocation3], 4294959104 }
 0x15b   :  { %1610 = vsyncpa [#allocation3], 1 }

</bundles_post_ra>
